<compile_context>
chip_gen: v7x
topology: tpu7x:2x2x1
jax: 0.10.0
libtpu: 0.0.40
codegen_flags: <defaults>
</compile_context>

<pallas_src>
import math
import jax
import jax.numpy as jnp
from jax.experimental import pallas as pl
from jax.experimental.pallas import tpu as pltpu


_VMEM_LIMIT_BYTES = 32 * 1024 * 1024    # safe scoped VMEM limit on v5e/v6e/v7x
_MAX_BATCH_TILE_MLP = 1024              # ~0.25-1 MiB per input tile at these widths
_MAX_BATCH_TILE_LIN = 512


# ----------------------------- kernels ------------------------------------ #

def _mlp_kernel(x1_ref, x2_ref, w1a_ref, w1b_ref, b1_ref, w2_ref, b2_ref, o_ref):
    """z = fc2(relu(x1 @ W1a + x2 @ W1b + b1)) for one batch tile."""
    h = jnp.dot(x1_ref[...], w1a_ref[...], preferred_element_type=jnp.float32)
    h = h + jnp.dot(x2_ref[...], w1b_ref[...], preferred_element_type=jnp.float32)
    h = jnp.maximum(h + b1_ref[...], 0.0)                       # ReLU
    z = jnp.dot(h, w2_ref[...], preferred_element_type=jnp.float32)
    o_ref[...] = (z + b2_ref[...]).astype(o_ref.dtype)


def _linear_sum_kernel(x1_ref, x2_ref, w_ref, b_ref, z_ref):
    """z = sum_over_walks(fc(cat(x1, x2, dim=-2)).squeeze(-1))
         = (sum_w x1 + sum_w x2) . w + (L1+L2) * b     (reduction is linear).
    Walk axis is reduced first (cheap sublane sum), then one lane reduction.
    """
    xs = jnp.sum(x1_ref[...], axis=-2) + jnp.sum(x2_ref[...], axis=-2)   # [TB, D]
    total_walks = x1_ref.shape[-2] + x2_ref.shape[-2]
    z = jnp.sum(xs * w_ref[...], axis=-1, keepdims=True) + total_walks * b_ref[0]
    z_ref[...] = z.astype(z_ref.dtype)


# ----------------------------- init helpers -------------------------------- #

def _xavier_normal(key, out_f, in_f):
    std = math.sqrt(2.0 / (in_f + out_f))
    return std * jax.random.normal(key, (out_f, in_f), dtype=jnp.float32)


def _torch_bias(key, out_f, in_f):
    bound = 1.0 / math.sqrt(in_f)
    return jax.random.uniform(key, (out_f,), minval=-bound, maxval=bound,
                              dtype=jnp.float32)


# ----------------------------- module -------------------------------------- #

class MergeLayer:
    def __init__(self, dim1, dim2, dim3, dim4, non_linear=True, *,
                 key=jax.random.PRNGKey(0), compute_dtype=jnp.float32):
        k1, k2, k3, k4, k5, k6 = jax.random.split(key, 6)
        self.non_linear = non_linear
        self.compute_dtype = compute_dtype

        # Raw (torch-layout) parameters, kept for reference math.
        self.w1 = _xavier_normal(k1, dim3, dim1 + dim2)    # [d3, d1+d2]
        self.b1 = _torch_bias(k2, dim3, dim1 + dim2)       # [d3]
        self.w2 = _xavier_normal(k3, dim4, dim3)           # [d4, d3]
        self.b2 = _torch_bias(k4, dim4, dim3)              # [d4]

        # Kernel-layout parameters: transposed / split / broadcast ONCE here.
        self.w1a_t = jnp.asarray(self.w1[:, :dim1].T, dtype=compute_dtype)  # [d1, d3]
        self.w1b_t = jnp.asarray(self.w1[:, dim1:].T, dtype=compute_dtype)  # [d2, d3]
        self.w2_t = jnp.asarray(self.w2.T, dtype=compute_dtype)             # [d3, d4]
        self.b1_2d = self.b1[None, :]                                       # [1, d3] f32
        self.b2_2d = self.b2[None, :]                                       # [1, d4] f32

        if not non_linear:
            assert dim1 == dim2
            self.w_fc = _xavier_normal(k5, 1, dim1)        # [1, d1]
            self.b_fc = _torch_bias(k6, 1, dim1)           # [1]

    # ---- non_linear=True : batch-tiled MLP ---------------------------------
    def _forward_nonlinear(self, x1, x2):
        B = x1.shape[0]
        d1, d3 = self.w1a_t.shape
        d2 = self.w1b_t.shape[0]
        d4 = self.w2_t.shape[1]

        tb = B if B <= _MAX_BATCH_TILE_MLP else _MAX_BATCH_TILE_MLP
        grid = (pl.cdiv(B, tb),)

        x1 = x1.astype(self.compute_dtype)
        x2 = x2.astype(self.compute_dtype)

        return pl.pallas_call(
            _mlp_kernel,
            out_shape=jax.ShapeDtypeStruct((B, d4), jnp.float32),
            grid=grid,
            in_specs=[
                pl.BlockSpec((tb, d1), lambda i: (i, 0)),      # x1 tile
                pl.BlockSpec((tb, d2), lambda i: (i, 0)),      # x2 tile
                pl.BlockSpec((d1, d3), lambda i: (0, 0)),      # W1a (DMA'd once)
                pl.BlockSpec((d2, d3), lambda i: (0, 0)),      # W1b (DMA'd once)
                pl.BlockSpec((1, d3), lambda i: (0, 0)),       # b1
                pl.BlockSpec((d3, d4), lambda i: (0, 0)),      # W2
                pl.BlockSpec((1, d4), lambda i: (0, 0)),       # b2
            ],
            out_specs=pl.BlockSpec((tb, d4), lambda i: (i, 0)),
            compiler_params=pltpu.CompilerParams(
                dimension_semantics=("parallel",),
                vmem_limit_bytes=_VMEM_LIMIT_BYTES),
        )(x1, x2, self.w1a_t, self.w1b_t, self.b1_2d, self.w2_t, self.b2_2d)

    # ---- non_linear=False : batch-tiled linear + walk reduction ------------
    def _forward_linear(self, x1, x2):
        B, L1, D = x1.shape
        L2 = x2.shape[1]

        tb = B if B <= _MAX_BATCH_TILE_LIN else _MAX_BATCH_TILE_LIN
        grid = (pl.cdiv(B, tb),)

        return pl.pallas_call(
            _linear_sum_kernel,
            out_shape=jax.ShapeDtypeStruct((B, 1), jnp.float32),
            grid=grid,
            in_specs=[
                pl.BlockSpec((tb, L1, D), lambda i: (i, 0, 0)),   # x1 tile
                pl.BlockSpec((tb, L2, D), lambda i: (i, 0, 0)),   # x2 tile
                pl.BlockSpec((1, D), lambda i: (0, 0)),           # w_fc (once)
                pl.BlockSpec(memory_space=pltpu.MemorySpace.SMEM),  # scalar bias
            ],
            out_specs=pl.BlockSpec((tb, 1), lambda i: (i, 0)),
            compiler_params=pltpu.CompilerParams(
                dimension_semantics=("parallel",),
                vmem_limit_bytes=_VMEM_LIMIT_BYTES),
        )(x1, x2, self.w_fc, self.b_fc)

    def __call__(self, x1, x2):
        if self.non_linear:
            return self._forward_nonlinear(x1, x2)
        # NOTE: reference forward discards z_walk and returns only z.
        return self._forward_linear(x1, x2)


# ----------------------------- references ---------------------------------- #

def _ref_nonlinear(m, x1, x2):
    x = jnp.concatenate([x1, x2], axis=-1)
    h = jnp.maximum(x @ m.w1.T + m.b1, 0.0)
    return h @ m.w2.T + m.b2


def _ref_linear(m, x1, x2):
    x = jnp.concatenate([x1, x2], axis=-2)
    z_walk = (x @ m.w_fc.T + m.b_fc)[..., 0]
    return jnp.sum(z_walk, axis=-1, keepdims=True)


# ----------------------------- main ----------------------------------------- #

if __name__ == "__main__":
    key = jax.random.PRNGKey(0)
    k_x1, k_x2, k_y1, k_y2, k_p1, k_p2 = jax.random.split(key, 6)

    # non_linear=True (default branch): x1,x2 are [batch, features]
    B, d1, d2, d3, d4 = 8, 32, 32, 64, 16
    x1 = jax.random.normal(k_x1, (B, d1), dtype=jnp.float32)
    x2 = jax.random.normal(k_x2, (B, d2), dtype=jnp.float32)
    merge_nl = MergeLayer(d1, d2, d3, d4, non_linear=True, key=k_p1)
    z_nl = jax.block_until_ready(merge_nl(x1, x2))
    assert z_nl.shape == (B, d4)
    assert jnp.allclose(z_nl, _ref_nonlinear(merge_nl, x1, x2),
                        atol=1e-5, rtol=1e-5)

    # non_linear=False branch: x1,x2 are [batch, walks, features]
    Bw, L = 2, 4
    y1 = jax.random.normal(k_y1, (Bw, L, d1), dtype=jnp.float32)
    y2 = jax.random.normal(k_y2, (Bw, L, d1), dtype=jnp.float32)
    merge_lin = MergeLayer(d1, d1, d3, d4, non_linear=False, key=k_p2)
    z_lin = jax.block_until_ready(merge_lin(y1, y2))
    assert z_lin.shape == (Bw, 1)
    assert jnp.allclose(z_lin, _ref_linear(merge_lin, y1, y2),
                        atol=1e-5, rtol=1e-5)

    print("KERNEL_OK")
</pallas_src>

<mosaic_0001>
module attributes {stable_mosaic.version = 11 : i64} {
  func.func @_mlp_kernel(%arg0: i32, %arg1: memref<8x32xf32, #tpu.memory_space<vmem>>, %arg2: memref<8x32xf32, #tpu.memory_space<vmem>>, %arg3: memref<32x64xf32, #tpu.memory_space<vmem>>, %arg4: memref<32x64xf32, #tpu.memory_space<vmem>>, %arg5: memref<1x64xf32, #tpu.memory_space<vmem>>, %arg6: memref<64x16xf32, #tpu.memory_space<vmem>>, %arg7: memref<1x16xf32, #tpu.memory_space<vmem>>, %arg8: memref<8x16xf32, #tpu.memory_space<vmem>>) attributes {dimension_semantics = [#tpu.dimension_semantics<parallel>], iteration_bounds = array<i64: 1>, scalar_prefetch = 0 : i64, scratch_operands = 0 : i64, tpu.core_type = #tpu.core_type<tc>, window_params = [{transform_indices = @transform_0, window_bounds = array<i64: 8, 32>}, {transform_indices = @transform_1, window_bounds = array<i64: 8, 32>}, {pipeline_mode = #tpu.pipeline_mode<synchronous>, transform_indices = @transform_2, window_bounds = array<i64: 32, 64>}, {pipeline_mode = #tpu.pipeline_mode<synchronous>, transform_indices = @transform_3, window_bounds = array<i64: 32, 64>}, {pipeline_mode = #tpu.pipeline_mode<synchronous>, transform_indices = @transform_4, window_bounds = array<i64: 1, 64>}, {pipeline_mode = #tpu.pipeline_mode<synchronous>, transform_indices = @transform_5, window_bounds = array<i64: 64, 16>}, {pipeline_mode = #tpu.pipeline_mode<synchronous>, transform_indices = @transform_6, window_bounds = array<i64: 1, 16>}, {transform_indices = @transform_7, window_bounds = array<i64: 8, 16>}]} {
    %c0 = arith.constant 0 : index
    %c0_0 = arith.constant 0 : index
    %0 = vector.load %arg1[%c0, %c0_0] : memref<8x32xf32, #tpu.memory_space<vmem>>, vector<8x32xf32>
    %c0_1 = arith.constant 0 : index
    %c0_2 = arith.constant 0 : index
    %1 = vector.load %arg3[%c0_1, %c0_2] : memref<32x64xf32, #tpu.memory_space<vmem>>, vector<32x64xf32>
    %cst = arith.constant dense<0.000000e+00> : vector<8x64xf32>
    %2 = tpu.matmul %0, %1, %cst {dimension_numbers = #tpu.dot_dimension_numbers<[1], [0], [0], [1], [0, 0, 1, 1], [], []>} : vector<8x32xf32>, vector<32x64xf32>, vector<8x64xf32> -> vector<8x64xf32>
    %c0_3 = arith.constant 0 : index
    %c0_4 = arith.constant 0 : index
    %3 = vector.load %arg2[%c0_3, %c0_4] : memref<8x32xf32, #tpu.memory_space<vmem>>, vector<8x32xf32>
    %c0_5 = arith.constant 0 : index
    %c0_6 = arith.constant 0 : index
    %4 = vector.load %arg4[%c0_5, %c0_6] : memref<32x64xf32, #tpu.memory_space<vmem>>, vector<32x64xf32>
    %cst_7 = arith.constant dense<0.000000e+00> : vector<8x64xf32>
    %5 = tpu.matmul %3, %4, %cst_7 {dimension_numbers = #tpu.dot_dimension_numbers<[1], [0], [0], [1], [0, 0, 1, 1], [], []>} : vector<8x32xf32>, vector<32x64xf32>, vector<8x64xf32> -> vector<8x64xf32>
    %6 = arith.addf %2, %5 : vector<8x64xf32>
    %c0_8 = arith.constant 0 : index
    %c0_9 = arith.constant 0 : index
    %7 = vector.load %arg5[%c0_8, %c0_9] : memref<1x64xf32, #tpu.memory_space<vmem>>, vector<1x64xf32>
    %8 = vector.broadcast %7 : vector<1x64xf32> to vector<8x64xf32>
    %9 = arith.addf %6, %8 : vector<8x64xf32>
    %cst_10 = arith.constant 0.000000e+00 : f32
    %10 = vector.broadcast %cst_10 : f32 to vector<8x64xf32>
    %11 = arith.maximumf %9, %10 : vector<8x64xf32>
    %c0_11 = arith.constant 0 : index
    %c0_12 = arith.constant 0 : index
    %12 = vector.load %arg6[%c0_11, %c0_12] : memref<64x16xf32, #tpu.memory_space<vmem>>, vector<64x16xf32>
    %cst_13 = arith.constant dense<0.000000e+00> : vector<8x16xf32>
    %13 = tpu.matmul %11, %12, %cst_13 {dimension_numbers = #tpu.dot_dimension_numbers<[1], [0], [0], [1], [0, 0, 1, 1], [], []>} : vector<8x64xf32>, vector<64x16xf32>, vector<8x16xf32> -> vector<8x16xf32>
    %c0_14 = arith.constant 0 : index
    %c0_15 = arith.constant 0 : index
    %14 = vector.load %arg7[%c0_14, %c0_15] : memref<1x16xf32, #tpu.memory_space<vmem>>, vector<1x16xf32>
    %15 = vector.broadcast %14 : vector<1x16xf32> to vector<8x16xf32>
    %16 = arith.addf %13, %15 : vector<8x16xf32>
    %c0_16 = arith.constant 0 : index
    %c0_17 = arith.constant 0 : index
    %17 = vector.load %arg8[%c0_16, %c0_17] : memref<8x16xf32, #tpu.memory_space<vmem>>, vector<8x16xf32>
    tpu.vector_store %arg8[%c0_16, %c0_17], %16 {strides = array<i32>} : memref<8x16xf32, #tpu.memory_space<vmem>>, vector<8x16xf32>,
    return
  }
  func.func @transform_0(%arg0: i32) -> (i32, i32) {
    %c0_i32 = arith.constant 0 : i32
    %c0_i32_0 = arith.constant 0 : i32
    return %arg0, %c0_i32 : i32, i32
  }
  func.func @transform_1(%arg0: i32) -> (i32, i32) {
    %c0_i32 = arith.constant 0 : i32
    %c0_i32_0 = arith.constant 0 : i32
    return %arg0, %c0_i32 : i32, i32
  }
  func.func @transform_2(%arg0: i32) -> (i32, i32) {
    %c0_i32 = arith.constant 0 : i32
    %c0_i32_0 = arith.constant 0 : i32
    %c0_i32_1 = arith.constant 0 : i32
    return %c0_i32, %c0_i32_0 : i32, i32
  }
  func.func @transform_3(%arg0: i32) -> (i32, i32) {
    %c0_i32 = arith.constant 0 : i32
    %c0_i32_0 = arith.constant 0 : i32
    %c0_i32_1 = arith.constant 0 : i32
    return %c0_i32, %c0_i32_0 : i32, i32
  }
  func.func @transform_4(%arg0: i32) -> (i32, i32) {
    %c0_i32 = arith.constant 0 : i32
    %c0_i32_0 = arith.constant 0 : i32
    %c0_i32_1 = arith.constant 0 : i32
    return %c0_i32, %c0_i32_0 : i32, i32
  }
  func.func @transform_5(%arg0: i32) -> (i32, i32) {
    %c0_i32 = arith.constant 0 : i32
    %c0_i32_0 = arith.constant 0 : i32
    %c0_i32_1 = arith.constant 0 : i32
    return %c0_i32, %c0_i32_0 : i32, i32
  }
  func.func @transform_6(%arg0: i32) -> (i32, i32) {
    %c0_i32 = arith.constant 0 : i32
    %c0_i32_0 = arith.constant 0 : i32
    %c0_i32_1 = arith.constant 0 : i32
    return %c0_i32, %c0_i32_0 : i32, i32
  }
  func.func @transform_7(%arg0: i32) -> (i32, i32) {
    %c0_i32 = arith.constant 0 : i32
    %c0_i32_0 = arith.constant 0 : i32
    return %arg0, %c0_i32 : i32, i32
  }
}

</mosaic_0001>

<bundles_post_ra>
// kernel: tpu_custom_call.1
= control target key start
LH: loop header
LB: loop body
LE: loop exit
PB: predicated region body
PF: predicated region fallthrough
CT: control target
= control target key end

     0   :  { %v415_v3 = vmov 0.0|0.0   ;;  %vm416_vm0 = vmmov 0   ;;  %v417_v6 = vmov 0.0   ;;  %s534_s0 = inlined_call_operand.vmem [shape: f32[8,32], index: 0, kind: input, shape index: {}]   ;;  %s535_s1 = inlined_call_operand.vmem [shape: f32[8,32], index: 1, kind: input, shape index: {}]   ;;  %s536_s2 = inlined_call_operand.vmem [shape: f32[32,64], index: 2, kind: input, shape index: {}]   ;;  %s537_s3 = inlined_call_operand.vmem [shape: f32[32,64], index: 3, kind: input, shape index: {}]   ;;  %s538_s4 = inlined_call_operand.vmem [shape: f32[1,64], index: 4, kind: input, shape index: {}]   ;;  %s539_s5 = inlined_call_operand.vmem [shape: f32[64,16], index: 5, kind: input, shape index: {}]   ;;  %s540_s6 = inlined_call_operand.vmem [shape: f32[1,16], index: 6, kind: input, shape index: {}]   ;;  %s541_s7 = inlined_call_operand.hbm [shape: f32[8,16], index: 7, kind: output, shape index: {}]  }
   0x1   :  { %v33_v0 = vld [vmem:[%s537_s3] sm:$0xff]  ;;  %v34_v1 = vld [vmem:[%s537_s3 + $0x8] sm:$0xff]  ;;  %v35_v2 = vld [vmem:[%s537_s3 + $0x10] sm:$0xff]  ;;  %363 = vmatprep.subr.bf16.mxu1 %v415_v3  ;;  %330 = vmatprep.mubr.msk.f32.mxu1 %vm416_vm0, %v417_v6 }
   0x2   :  { %v364_v4 = vpack.c.bf16 %v34_v1, %v33_v0  ;;  %v36_v5 = vld [vmem:[%s537_s3 + $0x18] sm:$0xff]  ;;  %375 = vmatprep.subr.bf16.mxu0 %v415_v3  ;;  %360 = vmatprep.mubr.msk.f32.mxu0 %vm416_vm0, %v417_v6 }
   0x3   :  { %v367_v7 = vpack.c.bf16 %v36_v5, %v35_v2 }
   0x4   :  { %365 = vmatpush3.bf16.msra.mxu1 %v364_v4 }
   0x5   :  { %12 = vsyncpa [#allocation3], 0  ;;  %366 = vmatprep.subr.bf16.mxu1 %v415_v3  ;;  %v28_v8 = vld [vmem:[%s536_s2] sm:$0xff]  ;;  %v29_v9 = vld [vmem:[%s536_s2 + $0x8] sm:$0xff]  ;;  %vm37_vm1 = vcmask 261120   ;;  %vm208_vm2 = vcmask 523264  }
   0x6   :  { %v32_v10 = vld [vmem:[%s535_s1] sm:$0xff]  ;;  %v370_v11 = vpack.c.bf16 %v29_v9, %v28_v8  ;;  %v30_v12 = vld [vmem:[%s536_s2 + $0x10] sm:$0xff]  ;;  %v31_v13 = vld [vmem:[%s536_s2 + $0x18] sm:$0xff]  ;;  %vm282_vm3 = vcmask 130048  }
   0x7   :  { %v373_v14 = vpack.c.bf16 %v31_v13, %v30_v12  ;;  %v27_v15 = vld [vmem:[%s534_s0] sm:$0xff]  ;;  %v194_v17 = vld [vmem:[%s539_s5 + $0x8] sm:$0xff]  ;;  %v195_v19 = vld [vmem:[%s539_s5 + $0x10] sm:$0xff] }
   0x8   :  { %368 = vmatpush3.bf16.msra.mxu1 %v367_v7  ;;  %v193_v16 = vld [vmem:[%s539_s5] sm:$0xff]  ;;  %v196_v20 = vld [vmem:[%s539_s5 + $0x18] sm:$0xff]  ;;  %v198_v23 = vld [vmem:[%s539_s5 + $0x28] sm:$0xff] }
   0x9   :  { %369 = vmatprep.subr.bf16.mxu1 %v415_v3  ;;  %v376_v18 = vpack.c.bf16 %v194_v17, %v193_v16  ;;  %v379_v21 = vpack.c.bf16 %v196_v20, %v195_v19  ;;  %v197_v22 = vld [vmem:[%s539_s5 + $0x20] sm:$0xff]  ;;  %v199_v25 = vld [vmem:[%s539_s5 + $0x30] sm:$0xff]  ;;  %v200_v26 = vld [vmem:[%s539_s5 + $0x38] sm:$0xff]  ;;  %s418_s5 = smov [#allocation2]  }
   0xa   :  { %v382_v24 = vpack.c.bf16 %v198_v23, %v197_v22  ;;  %v385_v27 = vpack.c.bf16 %v200_v26, %v199_v25  ;;  %v300_v31 = vld [vmem:[%s538_s4] ss:$0 sm:$0xff]  ;;  %s290_s13 = sshll.u32 %s418_s5, 4  ;;  %s291_s13 = int_to_ptr.vmem [resolvable:$true] %s290_s13 }
   0xb   :  { %331 = vmatmul.mubr.msk.f32.vlgmr.msra.gmra.mrb[0].mxu1 %vm37_vm1, %v32_v10  ;;  %377 = vmatpush3.bf16.msra.mxu0 %v376_v18  ;;  %v301_v36 = vld [vmem:[%s540_s6] ss:$0 sm:$0xff]  ;;  %s391_s14 = scalar_lea.vmem %s291_s13, 128  ;;  %p396_p1 = scmp.lt.s32.totalorder %s291_s13, %s291_s13 }
   0xc   :  { %371 = vmatpush3.bf16.msra.mxu1 %v370_v11  ;;  %341 = vmatprep.mubr.msk.f32.mxu1 %vm416_vm0, %v417_v6  ;;  %p392_p0 = scmp.ne.s32.totalorder %s291_s13, %s391_s14  ;;  %p397_p2 = scmp.lt.s32.totalorder %s391_s14, %s391_s14 }
   0xd   :  { %372 = vmatprep.subr.bf16.mxu1 %v415_v3  ;;  %378 = vmatprep.subr.bf16.mxu0 %v415_v3 }
   0xe   :  { %p398_p3 = por %p397_p2, %p396_p1 }
   0xf   :  { %380 = vmatpush3.bf16.msra.mxu0 %v379_v21 }
  0x10   :  { %374 = vmatpush3.bf16.msra.mxu1 %v373_v14  ;;  %381 = vmatprep.subr.bf16.mxu0 %v415_v3  ;;  %p399_p4 = pnand %p398_p3, %p392_p0 }
  0x13   :  { %342 = vmatmul.mubr.msk.f32.vlgmr.msra.gmra.mrb[2].mxu1 %vm37_vm1, %v27_v15  ;;  %383 = vmatpush3.bf16.msra.mxu0 %v382_v24 }
  0x14   :  { %384 = vmatprep.subr.bf16.mxu0 %v415_v3 }
  0x17   :  { %386 = vmatpush3.bf16.msra.mxu0 %v385_v27 }
  0xde   :  { %v107_v28 = vpop.f32.mrb[0].mxu1 }
  0xdf   :  { %v332_v29 = vpop.f32.mrb[1].mxu1 }
  0xe6   :  { %v180_v30 = vpop.f32.mrb[2].mxu1 }
  0xe7   :  { %v181_v32 = vadd.f32 %v180_v30, %v107_v28  ;;  %v343_v33 = vpop.f32.mrb[3].mxu1 }
  0xe9   :  { %v191_v34 = vadd.f32 %v300_v31, %v181_v32 }
  0xeb   :  { %v192_v35 = vmax.f32 %v191_v34, 0.0 }
  0xed   :  { %361 = vmatmul.mubr.msk.f32.vlgmr.msra.gmra.mrb[0].mxu0 %vm208_vm2, %v192_v35 }
 0x1c0   :  { %v278_v37 = vpop.f32.mrb[0].mxu0 }
 0x1c1   :  { %v279_v38 = vadd.f32 %v301_v36, %v278_v37  ;;  %v362_v39 = vpop.f32.mrb[1].mxu0 }
 0x1c3   :  { %283 = vst.msk [vmem:[#allocation2] sm:$0xff] %vm282_vm3, %v279_v38 }
 0x1c4   :  { %402 = shalt.err (!%p399_p4)
}
 0x1c5   :  { %s403_s16 = scalar_lea.hbm %s541_s7, 128 }
 0x1c6   :  { %p404_p5 = scmp.ne.s32.totalorder %s541_s7, %s403_s16  ;;  %p407_p6 = scmp.lt.u32.totalorder %s403_s16, %s541_s7 }
 0x1c8   :  { %p409_p7 = pnand %p407_p6, %p404_p5 }
 0x1ca   :  { %412 = shalt.err (!%p409_p7)
}
 0x1cb   :  { %293 = dma.vmem_to_hbm [thread:$0]  %s291_s13, 128, %s541_s7, [#allocation3]  }
 0x1cc   :  { %413 = dma.done.wait [#allocation3], 128  }
 0x1cd   :  { %414 = vsyncadd [#allocation3], 4294967168 }
 0x1ce   :  { %297 = vsyncpa [#allocation3], 1 }

</bundles_post_ra>
